<compile_context>
chip_gen: v5e
topology: v5e:2x2
jax: 0.10.0
libtpu: 0.0.40
codegen_flags: <defaults>
</compile_context>

<pallas_src>
import jax
import jax.numpy as jnp
from jax.experimental import pallas as pl
from jax.experimental.pallas import tpu as pltpu


def _per_sample_loss(logits_ref, labels_ref, beta):
    """Per-row loss for the current tile. Returns (TILE_N, 1) float32."""
    x = logits_ref[...].astype(jnp.float32)       # upcast in-kernel (bf16 DMA ok)
    labels = labels_ref[...]                      # (T, 1) int32

    # Numerically-stable logsumexp along the class (lane) axis.
    m = jnp.max(x, axis=1, keepdims=True)         # (T, 1)
    shifted = x - m                               # (T, C)
    ex = jnp.exp(shifted)                         # (T, C)
    sumexp = jnp.sum(ex, axis=1, keepdims=True)   # (T, 1)
    log_sumexp = jnp.log(sumexp)                  # (T, 1)

    # Target-logit pick: single vselect + lane reduction (no one-hot cast/mul).
    col = jax.lax.broadcasted_iota(jnp.int32, x.shape, 1)
    picked = jnp.sum(jnp.where(col == labels, x, 0.0), axis=1, keepdims=True)

    ce = (log_sumexp + m) - picked                # per-sample cross-entropy

    # Fused entropy term: -sum(p * log p) = log(sumexp) - sum(ex*shifted)/sumexp
    s1 = jnp.sum(ex * shifted, axis=1, keepdims=True)
    neg_entropy = log_sumexp - s1 * pl.reciprocal(sumexp, approx=False)

    return beta * ce + (1.0 - beta) * neg_entropy  # (T, 1) f32


def _make_reduce_kernel(beta, n_total, tile_n):
    def kernel(logits_ref, labels_ref, out_ref, acc_ref):
        i = pl.program_id(0)

        @pl.when(i == 0)
        def _init():
            acc_ref[0] = 0.0

        per_sample = _per_sample_loss(logits_ref, labels_ref, beta)

        # Mask rows past N (remainder tile reads unspecified padding data).
        row = jax.lax.broadcasted_iota(jnp.int32, (tile_n, 1), 0) + i * tile_n
        per_sample = jnp.where(row < n_total, per_sample, 0.0)

        acc_ref[0] += jnp.sum(per_sample)

        @pl.when(i == pl.num_programs(0) - 1)
        def _finalize():
            out_ref[0, 0] = acc_ref[0] * (1.0 / n_total)

    return kernel


def _make_per_sample_kernel(beta, n_total, tile_n):
    def kernel(logits_ref, labels_ref, out_ref):
        i = pl.program_id(0)
        per_sample = _per_sample_loss(logits_ref, labels_ref, beta)
        row = jax.lax.broadcasted_iota(jnp.int32, (tile_n, 1), 0) + i * tile_n
        out_ref[...] = jnp.where(row < n_total, per_sample, 0.0)

    return kernel


def _round_up(x, m):
    return ((x + m - 1) // m) * m


def _normalize_tile_n(tile_n, n):
    """Keep the row tile a multiple of 8 and never larger than the batch."""
    if n < 8:
        return n                      # single full-dim block (exempt from 8-row rule)
    tile_n = max(8, min(int(tile_n), n))
    return (tile_n // 8) * 8


def _pick_tile_n(n, c, itemsize):
    # Target ~2 MiB per logits tile; x2 double-buffering stays well under the
    # scoped VMEM limit on v5e/v6e/v7x.
    target_bytes = 2 * 1024 * 1024
    t = target_bytes // max(1, c * itemsize)
    t = max(8, min(1024, (t // 8) * 8))
    return _normalize_tile_n(t, n)


def soft_bootstrapping_loss(y_pred, y, *, beta=0.95, reduce=True,
                            as_pseudo_label=True, tile_n=None):
    """y_pred: (N, C) float logits (any float dtype), y: (N,) int class labels."""
    del as_pseudo_label  # forward value is unaffected by stop_gradient
    n, c = y_pred.shape
    labels = y.astype(jnp.int32).reshape(n, 1)

    if tile_n is None:
        tile_n = _pick_tile_n(n, c, jnp.dtype(y_pred.dtype).itemsize)
    else:
        tile_n = _normalize_tile_n(tile_n, n)
    grid_n = pl.cdiv(n, tile_n)
    n_pad = grid_n * tile_n

    logits_spec = pl.BlockSpec((tile_n, c), lambda i: (i, 0))
    labels_spec = pl.BlockSpec((tile_n, 1), lambda i: (i, 0))

    if reduce:
        out = pl.pallas_call(
            _make_reduce_kernel(float(beta), n, tile_n),
            out_shape=jax.ShapeDtypeStruct((1, 1), jnp.float32),
            grid_spec=pltpu.PrefetchScalarGridSpec(
                num_scalar_prefetch=0,
                grid=(grid_n,),
                in_specs=[logits_spec, labels_spec],
                out_specs=pl.BlockSpec(memory_space=pltpu.SMEM),
                scratch_shapes=[pltpu.SMEM((1,), jnp.float32)],
            ),
            compiler_params=pltpu.CompilerParams(
                dimension_semantics=("arbitrary",),
                vmem_limit_bytes=32 * 1024 * 1024,
            ),
        )(y_pred, labels)
        return out[0, 0]

    out = pl.pallas_call(
        _make_per_sample_kernel(float(beta), n, tile_n),
        out_shape=jax.ShapeDtypeStruct((n_pad, 1), jnp.float32),
        grid_spec=pltpu.PrefetchScalarGridSpec(
            num_scalar_prefetch=0,
            grid=(grid_n,),
            in_specs=[logits_spec, labels_spec],
            out_specs=pl.BlockSpec((tile_n, 1), lambda i: (i, 0)),
        ),
        compiler_params=pltpu.CompilerParams(
            dimension_semantics=("parallel",),
            vmem_limit_bytes=32 * 1024 * 1024,
        ),
    )(y_pred, labels)
    return out[:n, 0]


def _reference(y_pred, y, beta=0.95, reduce=True):
    logp = jax.nn.log_softmax(y_pred, axis=1)
    p = jax.nn.softmax(y_pred, axis=1)
    ce = -jnp.take_along_axis(logp, y[:, None].astype(jnp.int32), axis=1)[:, 0]
    boot = -(1.0 - beta) * jnp.sum(p * logp, axis=1)
    out = beta * ce + boot
    return jnp.mean(out) if reduce else out


if __name__ == "__main__":
    key = jax.random.PRNGKey(0)
    k1, k2 = jax.random.split(key)

    # N not divisible by the tile to exercise remainder-tile masking.
    N, C = 50, 128
    y_pred = jax.random.normal(k1, (N, C), dtype=jnp.float32)
    y = jax.random.randint(k2, (N,), 0, C, dtype=jnp.int32)

    # reduce=True, 4-step grid with a remainder tile.
    loss = soft_bootstrapping_loss(y_pred, y, beta=0.95, reduce=True, tile_n=16)
    loss = jax.block_until_ready(loss)
    ref = _reference(y_pred, y, beta=0.95, reduce=True)
    assert jnp.allclose(loss, ref, rtol=1e-5, atol=1e-5), (loss, ref)

    # reduce=False (per-sample losses), parallel grid.
    per = soft_bootstrapping_loss(y_pred, y, beta=0.95, reduce=False, tile_n=16)
    per = jax.block_until_ready(per)
    ref_per = _reference(y_pred, y, beta=0.95, reduce=False)
    assert per.shape == (N,)
    assert jnp.allclose(per, ref_per, rtol=1e-5, atol=1e-5), (per, ref_per)

    # bf16 logits pass through without a wrapper-side f32 copy (f32 math in-kernel).
    y_pred_bf16 = y_pred.astype(jnp.bfloat16)
    loss_bf16 = soft_bootstrapping_loss(y_pred_bf16, y, beta=0.95, reduce=True)
    loss_bf16 = jax.block_until_ready(loss_bf16)
    ref_bf16 = _reference(y_pred_bf16.astype(jnp.float32), y, beta=0.95, reduce=True)
    assert jnp.allclose(loss_bf16, ref_bf16, rtol=1e-4, atol=1e-4), (loss_bf16, ref_bf16)

    print("KERNEL_OK")
</pallas_src>

<mosaic_0001>
module attributes {stable_mosaic.version = 11 : i64} {
  func.func @kernel(%arg0: i32, %arg1: memref<16x128xf32, #tpu.memory_space<vmem>>, %arg2: memref<16x1xi32, #tpu.memory_space<vmem>>, %arg3: memref<1x1xf32, #tpu.memory_space<smem>>, %arg4: memref<1xf32, #tpu.memory_space<smem>>) attributes {dimension_semantics = [#tpu.dimension_semantics<arbitrary>], iteration_bounds = array<i64: 4>, scalar_prefetch = 0 : i64, scratch_operands = 1 : i64, tpu.core_type = #tpu.core_type<tc>, window_params = [{transform_indices = @transform_0, window_bounds = array<i64: 16, 128>}, {transform_indices = @transform_1, window_bounds = array<i64: 16, 1>}, {transform_indices = @transform_2, window_bounds = array<i64: 1, 1>}]} {
    %c0_i32 = arith.constant 0 : i32
    %0 = arith.cmpi eq, %arg0, %c0_i32 : i32
    %1 = arith.extui %0 : i1 to i32
    %c0_i32_0 = arith.constant 0 : i32
    %2 = arith.cmpi ne, %1, %c0_i32_0 : i32
    scf.if %2 {
      %cst_15 = arith.constant 0.000000e+00 : f32
      %c0_16 = arith.constant 0 : index
      %51 = memref.load %arg4[%c0_16] : memref<1xf32, #tpu.memory_space<smem>>
      memref.store %cst_15, %arg4[%c0_16] : memref<1xf32, #tpu.memory_space<smem>>
    } else {
    }
    %c0 = arith.constant 0 : index
    %c0_1 = arith.constant 0 : index
    %3 = vector.load %arg1[%c0, %c0_1] : memref<16x128xf32, #tpu.memory_space<vmem>>, vector<16x128xf32>
    %c0_2 = arith.constant 0 : index
    %c0_3 = arith.constant 0 : index
    %4 = vector.load %arg2[%c0_2, %c0_3] : memref<16x1xi32, #tpu.memory_space<vmem>>, vector<16x1xi32>
    %cst = arith.constant dense<0xFF800000> : vector<16xf32>
    %5 = vector.multi_reduction <maximumf>, %3, %cst [1] : vector<16x128xf32> to vector<16xf32>
    %6 = vector.shape_cast %5 : vector<16xf32> to vector<16x1xf32>
    %7 = vector.broadcast %6 : vector<16x1xf32> to vector<16x128xf32>
    %8 = arith.subf %3, %7 : vector<16x128xf32>
    %9 = math.exp %8 : vector<16x128xf32>
    %cst_4 = arith.constant dense<0.000000e+00> : vector<16xf32>
    %10 = vector.multi_reduction <add>, %9, %cst_4 [1] : vector<16x128xf32> to vector<16xf32>
    %11 = vector.shape_cast %10 : vector<16xf32> to vector<16x1xf32>
    %12 = math.log %11 : vector<16x1xf32>
    %13 = tpu.iota {dimensions = array<i32: 1>} : vector<16x128xi32>
    %14 = vector.broadcast %4 : vector<16x1xi32> to vector<16x128xi32>
    %15 = arith.cmpi eq, %13, %14 : vector<16x128xi32>
    %cst_5 = arith.constant 0.000000e+00 : f32
    %16 = vector.broadcast %cst_5 : f32 to vector<16x128xf32>
    %17 = arith.select %15, %3, %16 : vector<16x128xi1>, vector<16x128xf32>
    %cst_6 = arith.constant dense<0.000000e+00> : vector<16xf32>
    %18 = vector.multi_reduction <add>, %17, %cst_6 [1] : vector<16x128xf32> to vector<16xf32>
    %19 = vector.shape_cast %18 : vector<16xf32> to vector<16x1xf32>
    %20 = arith.addf %12, %6 : vector<16x1xf32>
    %21 = arith.subf %20, %19 : vector<16x1xf32>
    %22 = arith.mulf %9, %8 : vector<16x128xf32>
    %cst_7 = arith.constant dense<0.000000e+00> : vector<16xf32>
    %23 = vector.multi_reduction <add>, %22, %cst_7 [1] : vector<16x128xf32> to vector<16xf32>
    %24 = vector.shape_cast %23 : vector<16xf32> to vector<16x1xf32>
    %25 = tpu.reciprocal %11 : vector<16x1xf32> -> vector<16x1xf32>
    %26 = arith.mulf %24, %25 : vector<16x1xf32>
    %27 = arith.subf %12, %26 : vector<16x1xf32>
    %cst_8 = arith.constant 0.949999988 : f32
    %28 = vector.broadcast %cst_8 : f32 to vector<16x1xf32>
    %29 = arith.mulf %28, %21 : vector<16x1xf32>
    %cst_9 = arith.constant 5.000000e-02 : f32
    %30 = vector.broadcast %cst_9 : f32 to vector<16x1xf32>
    %31 = arith.mulf %30, %27 : vector<16x1xf32>
    %32 = arith.addf %29, %31 : vector<16x1xf32>
    %33 = tpu.iota {dimensions = array<i32: 0>} : vector<16x1xi32>
    %c16_i32 = arith.constant 16 : i32
    %34 = arith.muli %arg0, %c16_i32 : i32
    %35 = vector.broadcast %34 : i32 to vector<16x1xi32>
    %36 = arith.addi %33, %35 : vector<16x1xi32>
    %c50_i32 = arith.constant 50 : i32
    %37 = vector.broadcast %c50_i32 : i32 to vector<16x1xi32>
    %38 = arith.cmpi slt, %36, %37 : vector<16x1xi32>
    %cst_10 = arith.constant 0.000000e+00 : f32
    %39 = vector.broadcast %cst_10 : f32 to vector<16x1xf32>
    %40 = arith.select %38, %32, %39 : vector<16x1xi1>, vector<16x1xf32>
    %c0_11 = arith.constant 0 : index
    %41 = memref.load %arg4[%c0_11] : memref<1xf32, #tpu.memory_space<smem>>
    %42 = vector.shape_cast %40 : vector<16x1xf32> to vector<1x16x1xf32>
    %cst_12 = arith.constant dense<0.000000e+00> : vector<1xf32>
    %43 = vector.multi_reduction <add>, %42, %cst_12 [1, 2] : vector<1x16x1xf32> to vector<1xf32>
    %44 = vector.shape_cast %43 : vector<1xf32> to vector<1x1x1xf32>
    %45 = vector.extract %44[0, 0, 0] : f32 from vector<1x1x1xf32>
    %46 = arith.addf %41, %45 : f32
    %c0_13 = arith.constant 0 : index
    %47 = memref.load %arg4[%c0_13] : memref<1xf32, #tpu.memory_space<smem>>
    memref.store %46, %arg4[%c0_13] : memref<1xf32, #tpu.memory_space<smem>>
    %c3_i32 = arith.constant 3 : i32
    %48 = arith.cmpi eq, %arg0, %c3_i32 : i32
    %49 = arith.extui %48 : i1 to i32
    %c0_i32_14 = arith.constant 0 : i32
    %50 = arith.cmpi ne, %49, %c0_i32_14 : i32
    scf.if %50 {
      %c0_15 = arith.constant 0 : index
      %51 = memref.load %arg4[%c0_15] : memref<1xf32, #tpu.memory_space<smem>>
      %cst_16 = arith.constant 2.000000e-02 : f32
      %52 = arith.mulf %51, %cst_16 : f32
      %c0_17 = arith.constant 0 : index
      %c0_18 = arith.constant 0 : index
      %53 = memref.load %arg3[%c0_17, %c0_18] : memref<1x1xf32, #tpu.memory_space<smem>>
      memref.store %52, %arg3[%c0_17, %c0_18] : memref<1x1xf32, #tpu.memory_space<smem>>
    } else {
    }
    return
  }
  func.func @transform_0(%arg0: i32) -> (i32, i32) {
    %c0_i32 = arith.constant 0 : i32
    %c0_i32_0 = arith.constant 0 : i32
    return %arg0, %c0_i32 : i32, i32
  }
  func.func @transform_1(%arg0: i32) -> (i32, i32) {
    %c0_i32 = arith.constant 0 : i32
    %c0_i32_0 = arith.constant 0 : i32
    return %arg0, %c0_i32 : i32, i32
  }
  func.func @transform_2(%arg0: i32) -> (i32, i32) {
    %c0_i32 = arith.constant 0 : i32
    %c0_i32_0 = arith.constant 0 : i32
    %c0_i32_1 = arith.constant 0 : i32
    return %c0_i32, %c0_i32_0 : i32, i32
  }
}

</mosaic_0001>

<bundles_post_ra>
// kernel: tpu_custom_call.1
= control target key start
LH: loop header
LB: loop body
LE: loop exit
PB: predicated region body
PF: predicated region fallthrough
CT: control target
= control target key end

     0   :  { %7 = vsyncpa [#allocation4], 0  ;;  %s479_s9 = smov 0   ;;  %s509_s0 = inlined_call_operand.vmem [shape: f32[50,128], index: 0, kind: input, shape index: {}]   ;;  %s510_s1 = inlined_call_operand.vmem [shape: s32[50,1], index: 1, kind: input, shape index: {}]   ;;  %s511_s2 = inlined_call_operand.hbm [shape: f32[1,1], index: 2, kind: output, shape index: {}]  }
   0x1 LB: > { %s485_s10 = sadd.s32 4294967295, %s459_s9   ;;  %p384_p0 = scmp.ge.s32.totalorder %s459_s9, 1  ;;  %s459_s9 = sphi %s479_s9, %s13_s9  }
   0x2   : > { %p136_p1 = scmp.lt.s32.totalorder %s459_s9, 5 }
   0x4   : > { %p137_p2 = pnand %p384_p0, %p136_p1 }
   0x5   : > { %s385_s11 = sshll.u32 (!%p137_p2), %s485_s10, 1  ;;  %s390_s19 = sshll.u32 (!%p137_p2), %s485_s10, 4 }
   0x6   : > { %140 = sbr.rel (%p137_p2) target bundleno = 482 (0x1e2), region = 28  ;;  %p171_p3 = scmp.lt.s32.totalorder (!%p137_p2), %s385_s11, 6 }
   0x7   : > { %p406_p4 = scmp.eq.s32.totalorder (!%p137_p2), %s485_s10, 0  ;;  %s462_s20 = smov (!%p137_p2), 0.0  }
   0x8   : > { %s328_s24 = sshll.u32 (!%p137_p2), %s511_s2, 4  ;;  %p407_p5 = scmp.eq.s32.totalorder (!%p137_p2), %s485_s10, 3  ;;  %s329_s24 = int_to_ptr.hbm [resolvable:$true] %s328_s24 }
   0x9   : > { %s463_s28 = smov (!%p137_p2), [#allocation3]  }
   0xb   : > { %v461_v0 = vmov 0   ;;  %s513_s11 = smov (!%p171_p3, %s385_s11), 6  ;;  %v222_v11 = vlaneseq  ;;  %v290_v49 = vstv %s390_s19  ;;  %vm298_vm12 = vcmask 7168   ;;  %399 = sst [smem:[#allocation2]] (%p406_p4), %s462_s20 }
   0xc   : > { %421 = vset.pattern.permute.xlu1 %v461_v0  ;;  %422 = vset.pattern.permute.xlu0 %v461_v0  ;;  %s386_s12 = sshll.u32 %s513_s11, 3  ;;  %s297_s21 = sld [smem:[#allocation2]] }
   0xd   : > { %s174_s15 = scalar_lea.vmem %s509_s0, %s386_s12  ;;  %s188_s18 = scalar_lea.vmem %s510_s1, %s386_s12  ;;  %v223_v16 = vand.u32 127, %v222_v11  ;;  %v287_v48 = vshrl.u32 %v222_v11, 7 }
   0xe   : > { %v200_v1 = vld [vmem:[%s174_s15] sm:$0xff]  ;;  %v201_v3 = vld [vmem:[%s174_s15 + $0x8] sm:$0xff] }
   0xf   : > { %v202_v2 = vld [vmem:[%s188_s18] sm:$0xff]  ;;  %204 = vmax.xlane.f32.xlu0 %v200_v1  ;;  %v203_v4 = vld [vmem:[%s188_s18 + $0x8] sm:$0xff]  ;;  %v288_v55 = vadd.s32 8, %v287_v48  ;;  %v291_v60 = vadd.s32 %v290_v49, %v287_v48 }
  0x10   : > { %225 = vperm.xlu1 %421, %v202_v2  }
  0x11   : > { %v292_v0 = vadd.s32 %v290_v49, %v288_v55  ;;  %vm293_vm10 = vcmp.lt.s32.totalorder %v291_v60, 50 }
  0x13   : > { %vm294_vm11 = vcmp.lt.s32.totalorder %v292_v0, 50 }
  0x17   : > { %206 = vmax.xlane.f32.xlu0 %v201_v3 }
  0x18   : > { %228 = vperm.xlu1 %421, %v203_v4  }
  0x82   : > { %v205_v5 = vpop.xlane.xlu0 %204  ;;  %v226_v8 = vpop.permute.xlu1 %225 }
  0x83   : > { %v208_v6 = vsub.f32 %v200_v1, %v205_v5  ;;  %vm230_vm1 = vcmp.eq.s32.totalorder %v223_v16, %v226_v8 }
  0x84   : > { %v232_v20 = vsel %vm230_vm1, %v200_v1, 0.0 }
  0x85   : > { %v210_v7 = vmul.f32 1.442695, %v208_v6 }
  0x87   : > { %423 = vpow2.f32 %v210_v7 }
  0x8a   : > { %v496_v9 = vpop.xlane.xlu0 %206  ;;  %v229_v15 = vpop.permute.xlu1 %228 }
  0x8b   : > { %v209_v10 = vsub.f32 %v201_v3, %v496_v9  ;;  %vm231_vm0 = vcmp.eq.s32.totalorder %v223_v16, %v229_v15 }
  0x8c   : > { %v233_v18 = vsel %vm231_vm0, %v201_v3, 0.0 }
  0x8d   : > { %v424_v12 = vpop.eup %423  ;;  %v212_v13 = vmul.f32 1.442695, %v209_v10 }
  0x8e   : > { %214 = vadd.xlane.f32.xlu2 %v424_v12  ;;  %v242_v14 = vmul.f32 %v424_v12, %v208_v6 }
  0x8f   : > { %425 = vpow2.f32 %v212_v13 }
  0x90   : > { %244 = vadd.xlane.f32.xlu0 %v242_v14 }
  0x95   : > { %v426_v17 = vpop.eup %425 }
  0x96   : > { %216 = vadd.xlane.f32.xlu2 %v426_v17  ;;  %v243_v19 = vmul.f32 %v426_v17, %v209_v10 }
  0x98   : > { %246 = vadd.xlane.f32.xlu1 %v243_v19  ;;  %236 = vadd.xlane.f32.xlu0 %v233_v18 }
  0x9e   : > { %234 = vadd.xlane.f32.xlu2 %v232_v20 }
 0x101   : > { %v215_v21 = vpop.xlane.xlu2 %214 }
 0x102   : > { %427 = vrcp.f32 %v215_v21  ;;  %v259_v26 = vand.u32 2147483648, %v215_v21  ;;  %v257_v28 = vand.u32 2147483647, %v215_v21  ;;  %vm253_vm3 = vweird.f32 %v215_v21 }
 0x103   : > { %429 = vlog2.f32 %v215_v21  ;;  %v245_v33 = vpop.xlane.xlu0 %244 }
 0x104   : > { %v260_v32 = vor.u32 1.1754944e-38, %v259_v26  ;;  %vm258_vm5 = vcmp.eq.f32.partialorder %v257_v28, 8.507059e+37 }
 0x108   : > { %v428_v22 = vpop.eup %427 }
 0x109   : > { %v249_v23 = vmul.f32 %v428_v22, %v215_v21  ;;  %v217_v24 = vpop.xlane.xlu2 %216  ;;  %vm254_vm2 = vweird.f32 %v428_v22  ;;  %v430_v29 = vpop.eup %429 }
 0x10a   : > { %431 = vrcp.f32 %v217_v24  ;;  %vm255_vm4 = vmor %vm253_vm3, %vm254_vm2  ;;  %v219_v35 = vmul.f32 0.6931472, %v430_v29  ;;  %v271_v42 = vand.u32 2147483647, %v217_v24  ;;  %v273_v43 = vand.u32 2147483648, %v217_v24 }
 0x10b   : > { %v250_v25 = vsub.f32 1.0, %v249_v23  ;;  %433 = vlog2.f32 %v217_v24  ;;  %vm267_vm7 = vweird.f32 %v217_v24  ;;  %v237_v54 = vpop.xlane.xlu0 %236  ;;  %v247_v59 = vpop.xlane.xlu1 %246 }
 0x10c   : > { %v238_v47 = vadd.f32 %v219_v35, %v205_v5  ;;  %v274_v53 = vor.u32 1.1754944e-38, %v273_v43  ;;  %vm272_vm9 = vcmp.eq.f32.partialorder %v271_v42, 8.507059e+37 }
 0x10d   : > { %v251_v27 = vmul.f32 %v428_v22, %v250_v25 }
 0x10f   : > { %v252_v30 = vadd.f32 %v428_v22, %v251_v27 }
 0x110   : > { %v432_v31 = vpop.eup %431 }
 0x111   : > { %v434_v34 = vpop.eup %433  ;;  %v256_v36 = vsel %vm255_vm4, %v428_v22, %v252_v30  ;;  %v263_v37 = vmul.f32 %v432_v31, %v217_v24  ;;  %v235_v44 = vpop.xlane.xlu2 %234  ;;  %vm268_vm6 = vweird.f32 %v432_v31 }
 0x112   : > { %v261_v38 = vsel %vm258_vm5, %v260_v32, %v256_v36  ;;  %v221_v40 = vmul.f32 0.6931472, %v434_v34  ;;  %v240_v51 = vsub.f32 %v238_v47, %v235_v44  ;;  %vm269_vm8 = vmor %vm267_vm7, %vm268_vm6 }
 0x113   : > { %v276_v39 = vmul.f32 %v261_v38, %v245_v33  ;;  %v264_v41 = vsub.f32 1.0, %v263_v37 }
 0x114   : > { %v239_v52 = vadd.f32 %v221_v40, %v496_v9  ;;  %v280_v62 = vmul.f32 0.95, %v240_v51 }
 0x115   : > { %v278_v45 = vsub.f32 %v219_v35, %v276_v39  ;;  %v265_v46 = vmul.f32 %v432_v31, %v264_v41 }
 0x116   : > { %v241_v63 = vsub.f32 %v239_v52, %v237_v54 }
 0x117   : > { %v266_v50 = vadd.f32 %v432_v31, %v265_v46  ;;  %v282_v56 = vmul.f32 0.05, %v278_v45 }
 0x118   : > { %v281_v4 = vmul.f32 0.95, %v241_v63 }
 0x119   : > { %v270_v57 = vsel %vm269_vm8, %v432_v31, %v266_v50  ;;  %v284_v2 = vadd.f32 %v282_v56, %v280_v62 }
 0x11a   : > { %v275_v58 = vsel %vm272_vm9, %v274_v53, %v270_v57 }
 0x11b   : > { %v277_v61 = vmul.f32 %v275_v58, %v247_v59  ;;  %v295_v6 = vsel %vm293_vm10, %v284_v2, 0.0 }
 0x11c   : > { %v299_v8 = vsel %vm298_vm12, %v295_v6, 0.0 }
 0x11d   : > { %v279_v1 = vsub.f32 %v221_v40, %v277_v61 }
 0x11f   : > { %v283_v3 = vmul.f32 0.05, %v279_v1 }
 0x121   : > { %v285_v5 = vadd.f32 %v283_v3, %v281_v4 }
 0x123   : > { %v296_v7 = vsel %vm294_vm11, %v285_v5, 0.0 }
 0x124   : > { %v300_v9 = vsel %vm298_vm12, %v296_v7, 0.0 }
 0x125   : > { %v301_v10 = vadd.f32 %v300_v9, %v299_v8 }
 0x127   : > { %302 = vadd.xlane.f32.xlu2 %v301_v10 }
 0x19a   : > { %v303_v11 = vpop.xlane.xlu2 %302 }
 0x19b   : > { %v304_v12 = vrot.slane %v303_v11, 4 }
 0x19d   : > { %v305_v13 = vadd.f32 %v304_v12, %v303_v11 }
 0x19f   : > { %v306_v14 = vrot.slane %v305_v13, 2 }
 0x1a1   : > { %v307_v15 = vadd.f32 %v306_v14, %v305_v13 }
 0x1a3   : > { %v308_v16 = vrot.slane %v307_v15, 1 }
 0x1a5   : > { %v309_v17 = vadd.f32 %v308_v16, %v307_v15 }
 0x1a7   : > { %396 = vpush %v309_v17 }
 0x1d8   : > { %s397_s25 = spop %396 }
 0x1d9   : > { %s311_s26 = sadd.f32 %s397_s25, %s297_s21 }
 0x1db   : > { %313 = sst [smem:[#allocation2]] %s311_s26  ;;  %s319_s27 = smul.f32 0.02, %s311_s26 }
 0x1dd   : > { %401 = sst [smem:[#allocation3]] (%p407_p5), %s319_s27 }
 0x1de   : > { %403 = dma.smem_to_hbm (%p407_p5), %s463_s28, 16, %s329_s24, [#allocation4]  }
 0x1df   : > { %454 = dma.done.wait (%p407_p5), [#allocation4], 16  }
 0x1e0   : > { %456 = vsyncadd (%p407_p5), [#allocation4], 4294967280 }
 0x1e1   : > { %337 = sfence }
 0x1e2 PF: > { %s13_s9 = sadd.s32 1, %s459_s9  }
 0x1e3   : > { %p10_p6 = scmp.ge.s32.totalorder %s13_s9, 6  }
 0x1e5   :  { %12 = sbr.rel (!%p10_p6) target bundleno = 1 (0x1), region = 69 }
 0x1ea   :  { %343 = vsyncpa [#allocation4], 1 }
 0x1eb   :  { %345 = vsyncpa [#allocation4 + $0x1], 1 }

</bundles_post_ra>
